<compile_context>
chip_gen: v7x
topology: tpu7x:2x2x1
jax: 0.10.0
libtpu: 0.0.40
codegen_flags: <defaults>
</compile_context>

<pallas_src>
import functools

import jax
import jax.numpy as jnp
from jax.experimental import pallas as pl
from jax.experimental.pallas import tpu as pltpu

SLIDE_WINDOW = 200
INPUT_SIZE = 3 * SLIDE_WINDOW      # 600
_MIN_SPLIT = 128                   # don't split batches smaller than 2*this


def autoencoder_kernel(x_ref,
                       w1_ref, b1_ref,
                       w2_ref, b2_ref,
                       w34_ref, b34_ref,
                       w5_ref, b5_ref,
                       w6_ref, b6_ref,
                       o_ref):
    """One (TB, 600) batch tile of the fused 5-matmul autoencoder forward."""
    cdt = w1_ref.dtype  # MXU operand dtype (bf16 by default, or f32)

    def linear(h, w_ref, b_ref):
        # MXU matmul with f32 accumulation; bias-add / ReLU stay f32 (VPU).
        return jnp.dot(h.astype(cdt), w_ref[...],
                       preferred_element_type=jnp.float32) + b_ref[...]

    h = jnp.maximum(linear(x_ref[...], w1_ref, b1_ref), 0.0)   # (TB, 128)
    h = jnp.maximum(linear(h, w2_ref, b2_ref), 0.0)            # (TB, 64)
    h = jnp.maximum(linear(h, w34_ref, b34_ref), 0.0)          # (TB, 64) fused enc-L3+dec-L1
    h = jnp.maximum(linear(h, w5_ref, b5_ref), 0.0)            # (TB, 128)
    o_ref[...] = linear(h, w6_ref, b6_ref).astype(o_ref.dtype)  # (TB, 600)


def prepare_params(params, compute_dtype=jnp.bfloat16):
    """One-time param prep (hoisted out of the forward path).

    Fuses the activation-free W3/W4 pair exactly (no ReLU between the latent
    and decoder-L1):  relu((h@W3+b3)@W4+b4) == relu(h@W34+b34), then casts
    weights to the MXU operand dtype.  Biases stay f32 (VPU epilogue)."""
    (w1, b1), (w2, b2), (w3, b3), (w4, b4), (w5, b5), (w6, b6) = params
    w34 = w3 @ w4                      # (64, 64), computed in f32
    b34 = b3 @ w4 + b4                 # (1, 64)
    weights = tuple(w.astype(compute_dtype) for w in (w1, w2, w34, w5, w6))
    biases = tuple(b.astype(jnp.float32) for b in (b1, b2, b34, b5, b6))
    return weights, biases


def _choose_tile(batch, block_batch):
    """Pick a batch tile: large (HBM/overhead bound) but >=2 tiles when it is
    cheap to do so (feeds both v7x TensorCores via the "parallel" axis)."""
    if batch > block_batch:
        return block_batch
    if batch >= 2 * _MIN_SPLIT:
        half = ((pl.cdiv(batch, 2) + 7) // 8) * 8   # multiple of 8 (sublane rule)
        return min(half, block_batch)
    return batch   # single tile == full array dim, always a legal block


@functools.partial(jax.jit, static_argnames=("block_batch", "out_dtype"))
def autoencoder_forward(x, prepared_params, *, block_batch=1024,
                        out_dtype=jnp.float32):
    """x: (B, 600) float32. prepared_params: output of prepare_params()."""
    weights, biases = prepared_params
    B, D = x.shape
    assert D == INPUT_SIZE

    tb = _choose_tile(B, block_batch)
    num_tiles = pl.cdiv(B, tb)
    b_pad = num_tiles * tb

    # Cheap batch-only zero pad (features untouched) so the last tile holds no
    # garbage rows; skipped entirely when B is already a tile multiple.
    if b_pad != B:
        x_in = jnp.zeros((b_pad, D), x.dtype).at[:B].set(x)
    else:
        x_in = x

    flat = [x_in]
    for w, b in zip(weights, biases):
        flat += [w, b]

    # x / out are tiled over the batch grid; weights & biases use a constant
    # index_map so they are DMA'd once and stay resident in VMEM.
    x_spec = pl.BlockSpec((tb, D), lambda i: (i, 0))
    const_specs = [
        pl.BlockSpec(a.shape, lambda i, nd=a.ndim: (0,) * nd) for a in flat[1:]
    ]
    out_spec = pl.BlockSpec((tb, D), lambda i: (i, 0))

    out_itemsize = jnp.dtype(out_dtype).itemsize
    param_bytes = sum(int(a.size) * a.dtype.itemsize for a in flat[1:])
    flops_per_row = 2 * (600 * 128 + 128 * 64 + 64 * 64 + 64 * 128 + 128 * 600)
    cost = pl.CostEstimate(
        flops=flops_per_row * b_pad,
        transcendentals=0,
        bytes_accessed=int(x_in.size) * x_in.dtype.itemsize
        + b_pad * D * out_itemsize + param_bytes,
    )

    # Double-buffered x/out tiles + resident weights; raise the scoped VMEM
    # limit only when large tiles need it (stay conservative for v7x: 64 MiB
    # physical VMEM — cap block_batch ~2048 with f32 out, or use bf16 out).
    vmem_est = 2 * tb * D * (x.dtype.itemsize + out_itemsize) + param_bytes
    cp_kwargs = dict(dimension_semantics=("parallel",))
    if vmem_est > (24 << 20):
        cp_kwargs["vmem_limit_bytes"] = min(int(vmem_est * 2), 96 << 20)

    out = pl.pallas_call(
        autoencoder_kernel,
        out_shape=jax.ShapeDtypeStruct((b_pad, D), out_dtype),
        grid=(num_tiles,),
        in_specs=[x_spec] + const_specs,
        out_specs=out_spec,
        compiler_params=pltpu.CompilerParams(**cp_kwargs),
        cost_estimate=cost,
    )(*flat)

    return out if b_pad == B else out[:B]


def init_params(key):
    """nn.Linear-style init; weights stored transposed, i.e. (in, out)."""
    dims = [(INPUT_SIZE, 128), (128, 64), (64, 32),
            (32, 64), (64, 128), (128, INPUT_SIZE)]
    params = []
    for (fan_in, fan_out) in dims:
        key, kw, kb = jax.random.split(key, 3)
        bound = 1.0 / jnp.sqrt(jnp.float32(fan_in))
        w = jax.random.uniform(kw, (fan_in, fan_out), jnp.float32, -bound, bound)
        b = jax.random.uniform(kb, (1, fan_out), jnp.float32, -bound, bound)
        params.append((w, b))
    return params


def reference_forward(x, params):
    """Pure-JAX f32 reference matching the original PyTorch module."""
    h = x
    for i, (w, b) in enumerate(params):
        h = h @ w + b
        if i in (0, 1, 3, 4):   # ReLU after all but the latent and output linears
            h = jnp.maximum(h, 0.0)
    return h


if __name__ == "__main__":
    key = jax.random.PRNGKey(0)
    key, kx = jax.random.split(key)

    B = 16   # small; block_batch=8 below forces a 2-step grid (exercises pipelining)
    x = jax.random.normal(kx, (B, INPUT_SIZE), jnp.float32)
    params = init_params(key)

    prepared_f32 = prepare_params(params, compute_dtype=jnp.float32)
    prepared_bf16 = prepare_params(params, compute_dtype=jnp.bfloat16)
    ref = reference_forward(x, params)

    # f32 MXU path: tight semantics check (only fp reassociation from the
    # exact W3@W4 fusion differs from the reference).
    out_f32 = jax.block_until_ready(
        autoencoder_forward(x, prepared_f32, block_batch=8))
    # bf16 MXU path (default operand dtype), f32 output stream.
    out_bf16 = jax.block_until_ready(
        autoencoder_forward(x, prepared_bf16, block_batch=8))
    # bf16 output stream (halves the largest HBM stream).
    out_bf16o = jax.block_until_ready(
        autoencoder_forward(x, prepared_bf16, block_batch=8,
                            out_dtype=jnp.bfloat16))
    # Ragged batch: exercises the batch-only pad + out[:B] slice path.
    out_rag = jax.block_until_ready(
        autoencoder_forward(x[:12], prepared_f32, block_batch=8))

    assert out_f32.shape == (B, INPUT_SIZE)
    assert out_bf16.shape == (B, INPUT_SIZE)
    assert out_bf16o.shape == (B, INPUT_SIZE) and out_bf16o.dtype == jnp.bfloat16
    assert out_rag.shape == (12, INPUT_SIZE)
    assert jnp.allclose(out_f32, ref, atol=1e-3, rtol=1e-3), "f32 kernel mismatch"
    assert jnp.allclose(out_rag, ref[:12], atol=1e-3, rtol=1e-3), "ragged mismatch"
    assert jnp.allclose(out_bf16, ref, atol=5e-2, rtol=5e-2), "bf16 kernel mismatch"
    assert jnp.allclose(out_bf16o.astype(jnp.float32), ref,
                        atol=6e-2, rtol=6e-2), "bf16-out kernel mismatch"

    print("KERNEL_OK")
</pallas_src>

<mosaic_0001>
module attributes {stable_mosaic.version = 11 : i64} {
  func.func @autoencoder_kernel(%arg0: i32, %arg1: memref<8x600xf32, #tpu.memory_space<vmem>>, %arg2: memref<600x128xf32, #tpu.memory_space<vmem>>, %arg3: memref<1x128xf32, #tpu.memory_space<vmem>>, %arg4: memref<128x64xf32, #tpu.memory_space<vmem>>, %arg5: memref<1x64xf32, #tpu.memory_space<vmem>>, %arg6: memref<64x64xf32, #tpu.memory_space<vmem>>, %arg7: memref<1x64xf32, #tpu.memory_space<vmem>>, %arg8: memref<64x128xf32, #tpu.memory_space<vmem>>, %arg9: memref<1x128xf32, #tpu.memory_space<vmem>>, %arg10: memref<128x600xf32, #tpu.memory_space<vmem>>, %arg11: memref<1x600xf32, #tpu.memory_space<vmem>>, %arg12: memref<8x600xf32, #tpu.memory_space<vmem>>) attributes {dimension_semantics = [#tpu.dimension_semantics<parallel>], iteration_bounds = array<i64: 2>, scalar_prefetch = 0 : i64, scratch_operands = 0 : i64, tpu.core_type = #tpu.core_type<tc>, window_params = [{transform_indices = @transform_0, window_bounds = array<i64: 8, 600>}, {pipeline_mode = #tpu.pipeline_mode<synchronous>, transform_indices = @transform_1, window_bounds = array<i64: 600, 128>}, {pipeline_mode = #tpu.pipeline_mode<synchronous>, transform_indices = @transform_2, window_bounds = array<i64: 1, 128>}, {pipeline_mode = #tpu.pipeline_mode<synchronous>, transform_indices = @transform_3, window_bounds = array<i64: 128, 64>}, {pipeline_mode = #tpu.pipeline_mode<synchronous>, transform_indices = @transform_4, window_bounds = array<i64: 1, 64>}, {pipeline_mode = #tpu.pipeline_mode<synchronous>, transform_indices = @transform_5, window_bounds = array<i64: 64, 64>}, {pipeline_mode = #tpu.pipeline_mode<synchronous>, transform_indices = @transform_6, window_bounds = array<i64: 1, 64>}, {pipeline_mode = #tpu.pipeline_mode<synchronous>, transform_indices = @transform_7, window_bounds = array<i64: 64, 128>}, {pipeline_mode = #tpu.pipeline_mode<synchronous>, transform_indices = @transform_8, window_bounds = array<i64: 1, 128>}, {pipeline_mode = #tpu.pipeline_mode<synchronous>, transform_indices = @transform_9, window_bounds = array<i64: 128, 600>}, {pipeline_mode = #tpu.pipeline_mode<synchronous>, transform_indices = @transform_10, window_bounds = array<i64: 1, 600>}, {transform_indices = @transform_11, window_bounds = array<i64: 8, 600>}]} {
    %c0 = arith.constant 0 : index
    %c0_0 = arith.constant 0 : index
    %0 = vector.load %arg1[%c0, %c0_0] : memref<8x600xf32, #tpu.memory_space<vmem>>, vector<8x600xf32>
    %c0_1 = arith.constant 0 : index
    %c0_2 = arith.constant 0 : index
    %1 = vector.load %arg2[%c0_1, %c0_2] : memref<600x128xf32, #tpu.memory_space<vmem>>, vector<600x128xf32>
    %cst = arith.constant dense<0.000000e+00> : vector<8x128xf32>
    %2 = tpu.matmul %0, %1, %cst {dimension_numbers = #tpu.dot_dimension_numbers<[1], [0], [0], [1], [0, 0, 1, 1], [], []>} : vector<8x600xf32>, vector<600x128xf32>, vector<8x128xf32> -> vector<8x128xf32>
    %c0_3 = arith.constant 0 : index
    %c0_4 = arith.constant 0 : index
    %3 = vector.load %arg3[%c0_3, %c0_4] : memref<1x128xf32, #tpu.memory_space<vmem>>, vector<1x128xf32>
    %4 = vector.broadcast %3 : vector<1x128xf32> to vector<8x128xf32>
    %5 = arith.addf %2, %4 : vector<8x128xf32>
    %cst_5 = arith.constant 0.000000e+00 : f32
    %6 = vector.broadcast %cst_5 : f32 to vector<8x128xf32>
    %7 = arith.maximumf %5, %6 : vector<8x128xf32>
    %c0_6 = arith.constant 0 : index
    %c0_7 = arith.constant 0 : index
    %8 = vector.load %arg4[%c0_6, %c0_7] : memref<128x64xf32, #tpu.memory_space<vmem>>, vector<128x64xf32>
    %cst_8 = arith.constant dense<0.000000e+00> : vector<8x64xf32>
    %9 = tpu.matmul %7, %8, %cst_8 {dimension_numbers = #tpu.dot_dimension_numbers<[1], [0], [0], [1], [0, 0, 1, 1], [], []>} : vector<8x128xf32>, vector<128x64xf32>, vector<8x64xf32> -> vector<8x64xf32>
    %c0_9 = arith.constant 0 : index
    %c0_10 = arith.constant 0 : index
    %10 = vector.load %arg5[%c0_9, %c0_10] : memref<1x64xf32, #tpu.memory_space<vmem>>, vector<1x64xf32>
    %11 = vector.broadcast %10 : vector<1x64xf32> to vector<8x64xf32>
    %12 = arith.addf %9, %11 : vector<8x64xf32>
    %cst_11 = arith.constant 0.000000e+00 : f32
    %13 = vector.broadcast %cst_11 : f32 to vector<8x64xf32>
    %14 = arith.maximumf %12, %13 : vector<8x64xf32>
    %c0_12 = arith.constant 0 : index
    %c0_13 = arith.constant 0 : index
    %15 = vector.load %arg6[%c0_12, %c0_13] : memref<64x64xf32, #tpu.memory_space<vmem>>, vector<64x64xf32>
    %cst_14 = arith.constant dense<0.000000e+00> : vector<8x64xf32>
    %16 = tpu.matmul %14, %15, %cst_14 {dimension_numbers = #tpu.dot_dimension_numbers<[1], [0], [0], [1], [0, 0, 1, 1], [], []>} : vector<8x64xf32>, vector<64x64xf32>, vector<8x64xf32> -> vector<8x64xf32>
    %c0_15 = arith.constant 0 : index
    %c0_16 = arith.constant 0 : index
    %17 = vector.load %arg7[%c0_15, %c0_16] : memref<1x64xf32, #tpu.memory_space<vmem>>, vector<1x64xf32>
    %18 = vector.broadcast %17 : vector<1x64xf32> to vector<8x64xf32>
    %19 = arith.addf %16, %18 : vector<8x64xf32>
    %cst_17 = arith.constant 0.000000e+00 : f32
    %20 = vector.broadcast %cst_17 : f32 to vector<8x64xf32>
    %21 = arith.maximumf %19, %20 : vector<8x64xf32>
    %c0_18 = arith.constant 0 : index
    %c0_19 = arith.constant 0 : index
    %22 = vector.load %arg8[%c0_18, %c0_19] : memref<64x128xf32, #tpu.memory_space<vmem>>, vector<64x128xf32>
    %cst_20 = arith.constant dense<0.000000e+00> : vector<8x128xf32>
    %23 = tpu.matmul %21, %22, %cst_20 {dimension_numbers = #tpu.dot_dimension_numbers<[1], [0], [0], [1], [0, 0, 1, 1], [], []>} : vector<8x64xf32>, vector<64x128xf32>, vector<8x128xf32> -> vector<8x128xf32>
    %c0_21 = arith.constant 0 : index
    %c0_22 = arith.constant 0 : index
    %24 = vector.load %arg9[%c0_21, %c0_22] : memref<1x128xf32, #tpu.memory_space<vmem>>, vector<1x128xf32>
    %25 = vector.broadcast %24 : vector<1x128xf32> to vector<8x128xf32>
    %26 = arith.addf %23, %25 : vector<8x128xf32>
    %cst_23 = arith.constant 0.000000e+00 : f32
    %27 = vector.broadcast %cst_23 : f32 to vector<8x128xf32>
    %28 = arith.maximumf %26, %27 : vector<8x128xf32>
    %c0_24 = arith.constant 0 : index
    %c0_25 = arith.constant 0 : index
    %29 = vector.load %arg10[%c0_24, %c0_25] : memref<128x600xf32, #tpu.memory_space<vmem>>, vector<128x600xf32>
    %cst_26 = arith.constant dense<0.000000e+00> : vector<8x600xf32>
    %30 = tpu.matmul %28, %29, %cst_26 {dimension_numbers = #tpu.dot_dimension_numbers<[1], [0], [0], [1], [0, 0, 1, 1], [], []>} : vector<8x128xf32>, vector<128x600xf32>, vector<8x600xf32> -> vector<8x600xf32>
    %c0_27 = arith.constant 0 : index
    %c0_28 = arith.constant 0 : index
    %31 = vector.load %arg11[%c0_27, %c0_28] : memref<1x600xf32, #tpu.memory_space<vmem>>, vector<1x600xf32>
    %32 = vector.broadcast %31 : vector<1x600xf32> to vector<8x600xf32>
    %33 = arith.addf %30, %32 : vector<8x600xf32>
    %c0_29 = arith.constant 0 : index
    %c0_30 = arith.constant 0 : index
    %34 = vector.load %arg12[%c0_29, %c0_30] : memref<8x600xf32, #tpu.memory_space<vmem>>, vector<8x600xf32>
    tpu.vector_store %arg12[%c0_29, %c0_30], %33 {strides = array<i32>} : memref<8x600xf32, #tpu.memory_space<vmem>>, vector<8x600xf32>,
    return
  }
  func.func @transform_0(%arg0: i32) -> (i32, i32) {
    %c0_i32 = arith.constant 0 : i32
    %c0_i32_0 = arith.constant 0 : i32
    return %arg0, %c0_i32 : i32, i32
  }
  func.func @transform_1(%arg0: i32) -> (i32, i32) {
    %c0_i32 = arith.constant 0 : i32
    %c0_i32_0 = arith.constant 0 : i32
    %c0_i32_1 = arith.constant 0 : i32
    return %c0_i32, %c0_i32_0 : i32, i32
  }
  func.func @transform_2(%arg0: i32) -> (i32, i32) {
    %c0_i32 = arith.constant 0 : i32
    %c0_i32_0 = arith.constant 0 : i32
    %c0_i32_1 = arith.constant 0 : i32
    return %c0_i32, %c0_i32_0 : i32, i32
  }
  func.func @transform_3(%arg0: i32) -> (i32, i32) {
    %c0_i32 = arith.constant 0 : i32
    %c0_i32_0 = arith.constant 0 : i32
    %c0_i32_1 = arith.constant 0 : i32
    return %c0_i32, %c0_i32_0 : i32, i32
  }
  func.func @transform_4(%arg0: i32) -> (i32, i32) {
    %c0_i32 = arith.constant 0 : i32
    %c0_i32_0 = arith.constant 0 : i32
    %c0_i32_1 = arith.constant 0 : i32
    return %c0_i32, %c0_i32_0 : i32, i32
  }
  func.func @transform_5(%arg0: i32) -> (i32, i32) {
    %c0_i32 = arith.constant 0 : i32
    %c0_i32_0 = arith.constant 0 : i32
    %c0_i32_1 = arith.constant 0 : i32
    return %c0_i32, %c0_i32_0 : i32, i32
  }
  func.func @transform_6(%arg0: i32) -> (i32, i32) {
    %c0_i32 = arith.constant 0 : i32
    %c0_i32_0 = arith.constant 0 : i32
    %c0_i32_1 = arith.constant 0 : i32
    return %c0_i32, %c0_i32_0 : i32, i32
  }
  func.func @transform_7(%arg0: i32) -> (i32, i32) {
    %c0_i32 = arith.constant 0 : i32
    %c0_i32_0 = arith.constant 0 : i32
    %c0_i32_1 = arith.constant 0 : i32
    return %c0_i32, %c0_i32_0 : i32, i32
  }
  func.func @transform_8(%arg0: i32) -> (i32, i32) {
    %c0_i32 = arith.constant 0 : i32
    %c0_i32_0 = arith.constant 0 : i32
    %c0_i32_1 = arith.constant 0 : i32
    return %c0_i32, %c0_i32_0 : i32, i32
  }
  func.func @transform_9(%arg0: i32) -> (i32, i32) {
    %c0_i32 = arith.constant 0 : i32
    %c0_i32_0 = arith.constant 0 : i32
    %c0_i32_1 = arith.constant 0 : i32
    return %c0_i32, %c0_i32_0 : i32, i32
  }
  func.func @transform_10(%arg0: i32) -> (i32, i32) {
    %c0_i32 = arith.constant 0 : i32
    %c0_i32_0 = arith.constant 0 : i32
    %c0_i32_1 = arith.constant 0 : i32
    return %c0_i32, %c0_i32_0 : i32, i32
  }
  func.func @transform_11(%arg0: i32) -> (i32, i32) {
    %c0_i32 = arith.constant 0 : i32
    %c0_i32_0 = arith.constant 0 : i32
    return %arg0, %c0_i32 : i32, i32
  }
}

</mosaic_0001>

<bundles_post_ra>
// kernel: autoencoder_forward.1
= control target key start
LH: loop header
LB: loop body
LE: loop exit
PB: predicated region body
PF: predicated region fallthrough
CT: control target
= control target key end

     0   :  { %16 = vsyncpa [#allocation3], 0  ;;  %s2766_s0 = inlined_call_operand.vmem [shape: f32[16,600], index: 0, kind: input, shape index: {}]   ;;  %s2767_s1 = inlined_call_operand.vmem [shape: f32[600,128], index: 1, kind: input, shape index: {}]   ;;  %s2768_s2 = inlined_call_operand.vmem [shape: f32[1,128], index: 2, kind: input, shape index: {}]   ;;  %s2769_s3 = inlined_call_operand.vmem [shape: f32[128,64], index: 3, kind: input, shape index: {}]   ;;  %s2770_s4 = inlined_call_operand.vmem [shape: f32[1,64], index: 4, kind: input, shape index: {}]   ;;  %s2771_s5 = inlined_call_operand.vmem [shape: f32[64,64], index: 5, kind: input, shape index: {}]   ;;  %s2772_s6 = inlined_call_operand.vmem [shape: f32[1,64], index: 6, kind: input, shape index: {}]   ;;  %s2773_s7 = inlined_call_operand.vmem [shape: f32[64,128], index: 7, kind: input, shape index: {}]   ;;  %s2774_s8 = inlined_call_operand.vmem [shape: f32[1,128], index: 8, kind: input, shape index: {}]   ;;  %s2775_s9 = inlined_call_operand.vmem [shape: f32[128,600], index: 9, kind: input, shape index: {}]   ;;  %s2776_s10 = inlined_call_operand.vmem [shape: f32[1,600], index: 10, kind: input, shape index: {}]   ;;  %s2777_s11 = inlined_call_operand.hbm [shape: f32[16,600], index: 11, kind: output, shape index: {}]  }
   0x1   :  { %18 = vsyncpa [#allocation3 + $0x1], 0  ;;  %s2028_s17 = smov 0   ;;  %s2030_s18 = smov 0  }
   0x2   :  { %s2032_s19 = smov 0   ;;  %s2034_s20 = smov 0  }
   0x3 LB: > { %2779 = sst [smem:[#allocation5_spill]] %s1958_s19  ;;  %s2049_s21 = sadd.s32 4294967295, %s1962_s20   ;;  %s1962_s20 = sphi %s2034_s20, %s2787_s20   ;;  %s1958_s19 = sphi %s2032_s19, %s2784_s19   ;;  %s1954_s18 = sphi %s2030_s18, %s2786_s18   ;;  %s1950_s17 = sphi %s2028_s17, %s2785_s17  }
   0x4   : > { %s1358_s22 = sadd.s32 4294967294, %s1962_s20   ;;  %s2053_s23 = sadd.s32 1, %s1962_s20  }
   0x5   : > { %s267_s24 = sadd.s32 1, %s1958_s19  ;;  %s264_s25 = ssub.s32 %s1962_s20, %s2053_s23 }
   0x6   : > { %p277_p0 = scmp.ne.s32.totalorder %s1958_s19, %s1954_s18  ;;  %p265_p1 = scmp.eq.s32.totalorder %s264_s25, 0 }
   0x7   : > { %p278_p2 = scmp.eq.s32.totalorder %s2049_s21, 1  ;;  %p283_p3 = scmp.ne.s32.totalorder %s1954_s18, %s1950_s17 }
   0x8   : > { %p284_p4 = scmp.eq.s32.totalorder %s1358_s22, 1  ;;  %p1361_p7 = scmp.ge.s32.totalorder %s1962_s20, 1 }
   0x9   : > { %s2064_s26 = scalar_select %p265_p1, %s1958_s19, %s267_s24  }
   0xa   : > { %p2066_p5 = por %p278_p2, %p277_p0  ;;  %p2070_p6 = por %p284_p4, %p283_p3 }
   0xb   : > { %2780 = sst [smem:[#allocation6_spill]] %s2064_s26  ;;  %p340_p8 = scmp.lt.s32.totalorder %s1962_s20, 3 }
   0xd   : > { %p341_p9 = pnand %p1361_p7, %p340_p8 }
   0xe   : > { %v406_v0 = vld [vmem:[%s2767_s1 + $0x80] sm:$0xff] (!%p341_p9)  ;;  %v407_v1 = vld [vmem:[%s2767_s1 + $0x88] sm:$0xff] (!%p341_p9)  ;;  %v408_v11 = vld [vmem:[%s2767_s1 + $0x90] sm:$0xff] (!%p341_p9)  ;;  %p380_p10 = scmp.lt.s32.totalorder (!%p341_p9), %s2049_s21, 1  ;;  %vm1965_vm0 = vmmov (!%p341_p9), 0   ;;  %vm472_vm1 = vcmask (!%p341_p9), 719872  }
   0xf   : > { %344 = sbr.rel (%p341_p9) target bundleno = 1195 (0x4ab), region = 64  ;;  %v390_v2 = vld [vmem:[%s2767_s1] sm:$0xff] (!%p341_p9)  ;;  %v1640_v3 = vpack.c.bf16 (!%p341_p9), %v407_v1, %v406_v0  ;;  %v391_v4 = vld [vmem:[%s2767_s1 + $0x8] sm:$0xff] (!%p341_p9)  ;;  %v409_v13 = vld [vmem:[%s2767_s1 + $0x98] sm:$0xff] (!%p341_p9)  ;;  %vm796_vm2 = vcmask (!%p341_p9), 523264   ;;  %s377_s16 = sand.u32 (!%p341_p9), 1, %s1954_s18  }
  0x10   : > { %v438_v5 = vld [vmem:[%s2767_s1 + $0x180] sm:$0xff] (!%p341_p9)  ;;  %v439_v6 = vld [vmem:[%s2767_s1 + $0x188] sm:$0xff] (!%p341_p9)  ;;  %v1642_v7 = vpack.c.bf16 (!%p341_p9), %v391_v4, %v390_v2  ;;  %v392_v14 = vld [vmem:[%s2767_s1 + $0x10] sm:$0xff] (!%p341_p9)  ;;  %v1644_v16 = vpack.c.bf16 (!%p341_p9), %v409_v13, %v408_v11  ;;  %s1285_s12 = scalar_lea.sflag (!%p341_p9), [#allocation3], %s377_s16 }
  0x11   : > { %v1672_v8 = vpack.c.bf16 (!%p341_p9), %v439_v6, %v438_v5  ;;  %v422_v9 = vld [vmem:[%s2767_s1 + $0x100] sm:$0xff] (!%p341_p9)  ;;  %v423_v10 = vld [vmem:[%s2767_s1 + $0x108] sm:$0xff] (!%p341_p9)  ;;  %1641 = vmatprep.subr.bf16.mxu0 (!%p341_p9), %v1640_v3  ;;  %v393_v15 = vld [vmem:[%s2767_s1 + $0x18] sm:$0xff] (!%p341_p9) }
  0x12   : > { %v1674_v12 = vpack.c.bf16 (!%p341_p9), %v423_v10, %v422_v9  ;;  %1643 = vmatpush3.bf16.msra.mxu0 (!%p341_p9), %v1642_v7  ;;  %v1646_v17 = vpack.c.bf16 (!%p341_p9), %v393_v15, %v392_v14  ;;  %v440_v18 = vld [vmem:[%s2767_s1 + $0x190] sm:$0xff] (!%p341_p9)  ;;  %v441_v19 = vld [vmem:[%s2767_s1 + $0x198] sm:$0xff] (!%p341_p9)  ;;  %v410_v23 = vld [vmem:[%s2767_s1 + $0xa0] sm:$0xff] (!%p341_p9) }
  0x13   : > { %1673 = vmatprep.subr.bf16.mxu1 (!%p341_p9), %v1672_v8  ;;  %v424_v20 = vld [vmem:[%s2767_s1 + $0x110] sm:$0xff] (!%p341_p9)  ;;  %v1676_v21 = vpack.c.bf16 (!%p341_p9), %v441_v19, %v440_v18  ;;  %v425_v22 = vld [vmem:[%s2767_s1 + $0x118] sm:$0xff] (!%p341_p9)  ;;  %v411_v24 = vld [vmem:[%s2767_s1 + $0xa8] sm:$0xff] (!%p341_p9)  ;;  %1645 = vmatprep.subr.bf16.mxu0 (!%p341_p9), %v1644_v16 }
  0x14   : > { %1675 = vmatpush3.bf16.msra.mxu1 (!%p341_p9), %v1674_v12  ;;  %v1678_v25 = vpack.c.bf16 (!%p341_p9), %v425_v22, %v424_v20  ;;  %v1648_v26 = vpack.c.bf16 (!%p341_p9), %v411_v24, %v410_v23  ;;  %v394_v27 = vld [vmem:[%s2767_s1 + $0x20] sm:$0xff] (!%p341_p9)  ;;  %v395_v28 = vld [vmem:[%s2767_s1 + $0x28] sm:$0xff] (!%p341_p9)  ;;  %v412_v35 = vld [vmem:[%s2767_s1 + $0xb0] sm:$0xff] (!%p341_p9) }
  0x15   : > { %v442_v29 = vld [vmem:[%s2767_s1 + $0x1a0] sm:$0xff] (!%p341_p9)  ;;  %1677 = vmatprep.subr.bf16.mxu1 (!%p341_p9), %v1676_v21  ;;  %v443_v30 = vld [vmem:[%s2767_s1 + $0x1a8] sm:$0xff] (!%p341_p9)  ;;  %v1650_v33 = vpack.c.bf16 (!%p341_p9), %v395_v28, %v394_v27  ;;  %v413_v36 = vld [vmem:[%s2767_s1 + $0xb8] sm:$0xff] (!%p341_p9) }
  0x16   : > { %v426_v31 = vld [vmem:[%s2767_s1 + $0x120] sm:$0xff]  ;;  %v427_v32 = vld [vmem:[%s2767_s1 + $0x128] sm:$0xff]  ;;  %1647 = vmatpush3.bf16.msra.mxu0 %v1646_v17  ;;  %v1680_v34 = vpack.c.bf16 %v443_v30, %v442_v29  ;;  %v396_v37 = vld [vmem:[%s2767_s1 + $0x30] sm:$0xff]  ;;  %v1652_v39 = vpack.c.bf16 %v413_v36, %v412_v35  ;;  %s2170_s15 = scalar_select %p380_p10, %s2049_s21, 1 }
  0x17   : > { %1649 = vmatprep.subr.bf16.mxu0 %v1648_v26  ;;  %v1682_v38 = vpack.c.bf16 %v427_v32, %v426_v31  ;;  %v397_v40 = vld [vmem:[%s2767_s1 + $0x38] sm:$0xff]  ;;  %v444_v41 = vld [vmem:[%s2767_s1 + $0x1b0] sm:$0xff]  ;;  %v414_v46 = vld [vmem:[%s2767_s1 + $0xc0] sm:$0xff] }
  0x18   : > { %1679 = vmatpush3.bf16.msra.mxu1 %v1678_v25  ;;  %v445_v42 = vld [vmem:[%s2767_s1 + $0x1b8] sm:$0xff]  ;;  %v428_v44 = vld [vmem:[%s2767_s1 + $0x130] sm:$0xff]  ;;  %v415_v47 = vld [vmem:[%s2767_s1 + $0xc8] sm:$0xff]  ;;  %v1654_v48 = vpack.c.bf16 %v397_v40, %v396_v37  ;;  %s1856_s13 = smul.u32 40, %s2170_s15  ;;  %v1964_v40 = vmov 0.0|0.0  }
  0x19   : > { %1681 = vmatprep.subr.bf16.mxu1 %v1680_v34  ;;  %v1684_v43 = vpack.c.bf16 %v445_v42, %v444_v41  ;;  %v429_v45 = vld [vmem:[%s2767_s1 + $0x138] sm:$0xff]  ;;  %v446_v49 = vld [vmem:[%s2767_s1 + $0x1c0] sm:$0xff]  ;;  %v447_v50 = vld [vmem:[%s2767_s1 + $0x1c8] sm:$0xff]  ;;  %v1656_v52 = vpack.c.bf16 %v415_v47, %v414_v46 }
  0x1a   : > { %1651 = vmatpush3.bf16.msra.mxu0 %v1650_v33  ;;  %v1686_v51 = vpack.c.bf16 %v429_v45, %v428_v44  ;;  %v398_v53 = vld [vmem:[%s2767_s1 + $0x40] sm:$0xff]  ;;  %v399_v54 = vld [vmem:[%s2767_s1 + $0x48] sm:$0xff]  ;;  %v1688_v56 = vpack.c.bf16 %v447_v50, %v446_v49  ;;  %v416_v58 = vld [vmem:[%s2767_s1 + $0xd0] sm:$0xff]  ;;  %s2227_s29 = scalar_lea.vmem %s2766_s0, %s1856_s13  ;;  %s1855_s13 = smul.u32 40, %s377_s16 }
  0x1b   : > { %1653 = vmatprep.subr.bf16.mxu0 %v1652_v39  ;;  %v430_v55 = vld [vmem:[%s2767_s1 + $0x140] sm:$0xff]  ;;  %v431_v57 = vld [vmem:[%s2767_s1 + $0x148] sm:$0xff]  ;;  %v417_v59 = vld [vmem:[%s2767_s1 + $0xd8] sm:$0xff]  ;;  %v1658_v62 = vpack.c.bf16 %v399_v54, %v398_v53 }
  0x1c   : > { %1683 = vmatpush3.bf16.msra.mxu1 %v1682_v38  ;;  %v448_v60 = vld [vmem:[%s2767_s1 + $0x1d0] sm:$0xff]  ;;  %v449_v61 = vld [vmem:[%s2767_s1 + $0x1d8] sm:$0xff]  ;;  %v1690_v63 = vpack.c.bf16 %v431_v57, %v430_v55  ;;  %v1660_v0 = vpack.c.bf16 %v417_v59, %v416_v58  ;;  %v418_v6 = vld [vmem:[%s2767_s1 + $0xe0] sm:$0xff]  ;;  %s379_s26 = scalar_lea.vmem [#allocation2], %s1855_s13 }
  0x1d   : > { %1685 = vmatprep.subr.bf16.mxu1 %v1684_v43  ;;  %v400_v1 = vld [vmem:[%s2767_s1 + $0x50] sm:$0xff]  ;;  %v401_v2 = vld [vmem:[%s2767_s1 + $0x58] sm:$0xff]  ;;  %v1692_v4 = vpack.c.bf16 %v449_v61, %v448_v60  ;;  %v419_v7 = vld [vmem:[%s2767_s1 + $0xe8] sm:$0xff]  ;;  %s1299_s25 = sshll.u32 %s379_s26, 4  ;;  %s2723_s25 = int_to_ptr.vmem [resolvable:$true] %s1299_s25 }
  0x1e   : > { %1655 = vmatpush3.bf16.msra.mxu0 %v1654_v48  ;;  %v432_v3 = vld [vmem:[%s2767_s1 + $0x150] sm:$0xff]  ;;  %v433_v5 = vld [vmem:[%s2767_s1 + $0x158] sm:$0xff]  ;;  %v450_v8 = vld [vmem:[%s2767_s1 + $0x1e0] sm:$0xff]  ;;  %v1662_v10 = vpack.c.bf16 %v401_v2, %v400_v1  ;;  %v1664_v14 = vpack.c.bf16 %v419_v7, %v418_v6  ;;  %v1966_v48 = vmov 0.0   ;;  %s1900_s14 = scalar_lea.vmem %s2723_s25, 640 }
  0x1f   : > { %1657 = vmatprep.subr.bf16.mxu0 %v1656_v52  ;;  %v451_v9 = vld [vmem:[%s2767_s1 + $0x1e8] sm:$0xff]  ;;  %v402_v11 = vld [vmem:[%s2767_s1 + $0x60] sm:$0xff]  ;;  %v1694_v13 = vpack.c.bf16 %v433_v5, %v432_v3  ;;  %v420_v19 = vld [vmem:[%s2767_s1 + $0xf0] sm:$0xff]  ;;  %p1901_p11 = scmp.ne.s32.totalorder %s2723_s25, %s1900_s14 }
  0x20   : > { %1687 = vmatpush3.bf16.msra.mxu1 %v1686_v51  ;;  %v386_v12 = vld [vmem:[%s2227_s29 + $0x8] sm:$0xff]  ;;  %v434_v16 = vld [vmem:[%s2767_s1 + $0x160] sm:$0xff]  ;;  %v1696_v18 = vpack.c.bf16 %v451_v9, %v450_v8  ;;  %v421_v20 = vld [vmem:[%s2767_s1 + $0xf8] sm:$0xff] }
  0x21   : > { %1689 = vmatprep.subr.bf16.mxu1 %v1688_v56  ;;  %v403_v15 = vld [vmem:[%s2767_s1 + $0x68] sm:$0xff]  ;;  %540 = vmatprep.mubr.f32.mxu0 %v386_v12  ;;  %v388_v21 = vld [vmem:[%s2227_s29 + $0x18] sm:$0xff]  ;;  %v452_v22 = vld [vmem:[%s2767_s1 + $0x1f0] sm:$0xff]  ;;  %v1668_v26 = vpack.c.bf16 %v421_v20, %v420_v19  ;;  %p1902_p12 = pnand %p1901_p11, %p2066_p5 }
  0x22   : > { %1659 = vmatpush3.bf16.msra.mxu0 %v1658_v62  ;;  %v435_v17 = vld [vmem:[%s2767_s1 + $0x168] sm:$0xff]  ;;  %v453_v23 = vld [vmem:[%s2767_s1 + $0x1f8] sm:$0xff]  ;;  %610 = vmatprep.mubr.f32.mxu1 %v388_v21  ;;  %v1666_v24 = vpack.c.bf16 %v403_v15, %v402_v11  ;;  %v404_v27 = vld [vmem:[%s2767_s1 + $0x70] sm:$0xff] }
  0x23   : > { %1661 = vmatprep.subr.bf16.mxu0 %v1660_v0  ;;  %v1698_v25 = vpack.c.bf16 %v435_v17, %v434_v16  ;;  %v405_v28 = vld [vmem:[%s2767_s1 + $0x78] sm:$0xff]  ;;  %v1700_v29 = vpack.c.bf16 %v453_v23, %v452_v22  ;;  %v436_v30 = vld [vmem:[%s2767_s1 + $0x170] sm:$0xff]  ;;  %v454_v34 = vld [vmem:[%s2767_s1 + $0x200] sm:$0xff]  ;;  %p1903_p13 = pneg %p1902_p12 }
  0x24   : > { %1691 = vmatpush3.bf16.msra.mxu1 %v1690_v63  ;;  %v437_v31 = vld [vmem:[%s2767_s1 + $0x178] sm:$0xff]  ;;  %v1670_v32 = vpack.c.bf16 %v405_v28, %v404_v27  ;;  %v455_v35 = vld [vmem:[%s2767_s1 + $0x208] sm:$0xff]  ;;  %v687_v36 = vld [vmem:[%s2769_s3] sm:$0xff] }
  0x25   : > { %1693 = vmatprep.subr.bf16.mxu1 %v1692_v4  ;;  %v1702_v33 = vpack.c.bf16 %v437_v31, %v436_v30  ;;  %v688_v37 = vld [vmem:[%s2769_s3 + $0x8] sm:$0xff]  ;;  %v385_v38 = vld [vmem:[%s2227_s29] sm:$0xff]  ;;  %v1705_v39 = vpack.c.bf16 %v455_v35, %v454_v34  ;;  %v387_v41 = vld [vmem:[%s2227_s29 + $0x10] sm:$0xff] }
  0x26   : > { %1663 = vmatpush3.bf16.msra.mxu0 %v1662_v10  ;;  %v456_v42 = vld [vmem:[%s2767_s1 + $0x210] sm:$0xff]  ;;  %v457_v43 = vld [vmem:[%s2767_s1 + $0x218] sm:$0xff]  ;;  %v1720_v44 = vpack.c.bf16 %v688_v37, %v687_v36  ;;  %v458_v46 = vld [vmem:[%s2767_s1 + $0x220] sm:$0xff] }
  0x27   : > { %1665 = vmatprep.subr.bf16.mxu0 %v1664_v14  ;;  %v1708_v45 = vpack.c.bf16 %v457_v43, %v456_v42  ;;  %v459_v47 = vld [vmem:[%s2767_s1 + $0x228] sm:$0xff]  ;;  %v460_v50 = vld [vmem:[%s2767_s1 + $0x230] sm:$0xff]  ;;  %v461_v51 = vld [vmem:[%s2767_s1 + $0x238] sm:$0xff] }
  0x28   : > { %1695 = vmatpush3.bf16.msra.mxu1 %v1694_v13  ;;  %v1711_v49 = vpack.c.bf16 %v459_v47, %v458_v46  ;;  %v1714_v52 = vpack.c.bf16 %v461_v51, %v460_v50  ;;  %v462_v53 = vld [vmem:[%s2767_s1 + $0x240] sm:$0xff]  ;;  %v463_v54 = vld [vmem:[%s2767_s1 + $0x248] sm:$0xff]  ;;  %v464_v56 = vld [vmem:[%s2767_s1 + $0x250] sm:$0xff] }
  0x29   : > { %1697 = vmatprep.subr.bf16.mxu1 %v1696_v18  ;;  %v1717_v55 = vpack.c.bf16 %v463_v54, %v462_v53  ;;  %v389_v57 = vld [vmem:[%s2227_s29 + $0x20] sm:$0xff]  ;;  %v689_v58 = vld [vmem:[%s2769_s3 + $0x10] sm:$0xff]  ;;  %v690_v59 = vld [vmem:[%s2769_s3 + $0x18] sm:$0xff]  ;;  %s1857_s29 = smul.u32 640, %s2049_s21  ;;  %s1967_s21 = smov [#allocation2]  }
  0x2a   : > { %1667 = vmatpush3.bf16.msra.mxu0 %v1666_v24  ;;  %v1723_v60 = vpack.c.bf16 %v690_v59, %v689_v58  ;;  %v691_v61 = vld [vmem:[%s2769_s3 + $0x20] sm:$0xff]  ;;  %v692_v62 = vld [vmem:[%s2769_s3 + $0x28] sm:$0xff]  ;;  %v693_v0 = vld [vmem:[%s2769_s3 + $0x30] sm:$0xff]  ;;  %s1904_s22 = sshll.u32 %s1967_s21, 4  ;;  %s1905_s22 = int_to_ptr.vmem [resolvable:$false] %s1904_s22 }
  0x2b   : > { %1669 = vmatprep.subr.bf16.mxu0 %v1668_v26  ;;  %v1726_v63 = vpack.c.bf16 %v692_v62, %v691_v61  ;;  %v694_v1 = vld [vmem:[%s2769_s3 + $0x38] sm:$0xff]  ;;  %v695_v3 = vld [vmem:[%s2769_s3 + $0x40] sm:$0xff]  ;;  %v696_v4 = vld [vmem:[%s2769_s3 + $0x48] sm:$0xff]  ;;  %s2721_s19 = scalar_lea.hbm %s2777_s11, %s1857_s29  ;;  %s1906_s24 = scalar_lea.vmem %s1905_s22, 1280 }
  0x2c   : > { %1699 = vmatpush3.bf16.msra.mxu1 %v1698_v25  ;;  %v1729_v2 = vpack.c.bf16 %v694_v1, %v693_v0  ;;  %v1732_v5 = vpack.c.bf16 %v696_v4, %v695_v3  ;;  %v697_v6 = vld [vmem:[%s2769_s3 + $0x50] sm:$0xff]  ;;  %v698_v7 = vld [vmem:[%s2769_s3 + $0x58] sm:$0xff]  ;;  %v699_v9 = vld [vmem:[%s2769_s3 + $0x60] sm:$0xff]  ;;  %p1907_p0 = scmp.lt.s32.totalorder %s2723_s25, %s1905_s22  ;;  %p1908_p1 = scmp.lt.s32.totalorder %s1906_s24, %s1900_s14 }
  0x2d   : > { %1701 = vmatprep.subr.bf16.mxu1 %v1700_v29  ;;  %v1735_v8 = vpack.c.bf16 %v698_v7, %v697_v6  ;;  %v700_v10 = vld [vmem:[%s2769_s3 + $0x68] sm:$0xff]  ;;  %v701_v12 = vld [vmem:[%s2769_s3 + $0x70] sm:$0xff]  ;;  %v702_v13 = vld [vmem:[%s2769_s3 + $0x78] sm:$0xff] }
  0x2e   : > { %1671 = vmatpush3.bf16.msra.mxu0 %v1670_v32  ;;  %v1738_v11 = vpack.c.bf16 %v700_v10, %v699_v9  ;;  %v1741_v14 = vpack.c.bf16 %v702_v13, %v701_v12  ;;  %v1363_v16 = vld [vmem:[%s2768_s2] ss:$0 sm:$0xff]  ;;  %v782_v25 = vld [vmem:[%s2771_s5 + $0x8] sm:$0xff]  ;;  %v783_v31 = vld [vmem:[%s2771_s5 + $0x10] sm:$0xff]  ;;  %p1909_p2 = por %p1908_p1, %p1907_p0 }
  0x2f   : > { %1704 = vmatprep.subr.bf16.mxu0 %v1964_v40  ;;  %v781_v24 = vld [vmem:[%s2771_s5] sm:$0xff]  ;;  %v784_v32 = vld [vmem:[%s2771_s5 + $0x18] sm:$0xff]  ;;  %v786_v35 = vld [vmem:[%s2771_s5 + $0x28] sm:$0xff] }
  0x30   : > { %1703 = vmatpush3.bf16.msra.mxu1 %v1702_v33  ;;  %v1744_v29 = vpack.c.bf16 %v782_v25, %v781_v24  ;;  %v1747_v33 = vpack.c.bf16 %v784_v32, %v783_v31  ;;  %v785_v34 = vld [vmem:[%s2771_s5 + $0x20] sm:$0xff]  ;;  %v787_v37 = vld [vmem:[%s2771_s5 + $0x30] sm:$0xff]  ;;  %v872_v43 = vld [vmem:[%s2773_s7 + $0x8] sm:$0xff]  ;;  %p1910_p3 = pnand %p1909_p2, %p1903_p13 }
  0x31   : > { %1719 = vmatprep.subr.bf16.mxu1 %v1964_v40  ;;  %541 = vmatmul.mubr.f32.vlgmr.msra.gmra.mrb[0].mxu0 %v385_v38  ;;  %v1750_v36 = vpack.c.bf16 %v786_v35, %v785_v34  ;;  %v788_v38 = vld [vmem:[%s2771_s5 + $0x38] sm:$0xff]  ;;  %v871_v42 = vld [vmem:[%s2773_s7] sm:$0xff]  ;;  %v873_v50 = vld [vmem:[%s2773_s7 + $0x10] sm:$0xff] }
  0x32   : > { %1706 = vmatpush3.bf16.msra.mxu0 %v1705_v39  ;;  %1529 = vmatprep.mubr.msk.f32.mxu0 %vm1965_vm0, %v1966_v48  ;;  %v1753_v39 = vpack.c.bf16 %v788_v38, %v787_v37  ;;  %v1756_v47 = vpack.c.bf16 %v872_v43, %v871_v42  ;;  %v874_v51 = vld [vmem:[%s2773_s7 + $0x18] sm:$0xff]  ;;  %v875_v53 = vld [vmem:[%s2773_s7 + $0x20] sm:$0xff]  ;;  %v876_v54 = vld [vmem:[%s2773_s7 + $0x28] sm:$0xff] }
  0x33   : > { %611 = vmatmul.mubr.f32.vlgmr.msra.gmra.mrb[0].mxu1 %v387_v41  ;;  %1707 = vmatprep.subr.bf16.mxu0 %v1964_v40  ;;  %v1365_v41 = vld [vmem:[%s2770_s4] ss:$0 sm:$0xff]  ;;  %v961_v59 = vld [vmem:[%s2775_s9 + $0x8] sm:$0xff]  ;;  %v963_v0 = vld [vmem:[%s2775_s9 + $0x18] sm:$0xff] }
  0x34   : > { %1721 = vmatpush3.bf16.msra.mxu1 %v1720_v44  ;;  %1564 = vmatprep.mubr.msk.f32.mxu1 %vm1965_vm0, %v1966_v48  ;;  %v960_v61 = vld [vmem:[%s2775_s9] sm:$0xff]  ;;  %v971_v4 = vld [vmem:[%s2775_s9 + $0x58] sm:$0xff]  ;;  %v970_v6 = vld [vmem:[%s2775_s9 + $0x50] sm:$0xff] }
  0x35   : > { %1722 = vmatprep.subr.bf16.mxu1 %v1964_v40  ;;  %v968_v1 = vld [vmem:[%s2775_s9 + $0x40] sm:$0xff]  ;;  %v975_v7 = vld [vmem:[%s2775_s9 + $0x78] sm:$0xff]  ;;  %v981_v10 = vld [vmem:[%s2775_s9 + $0xa8] sm:$0xff] }
  0x36   : > { %1709 = vmatpush3.bf16.msra.mxu0 %v1708_v45  ;;  %v1799_v3 = vpack.c.bf16 %v968_v1, %v963_v0  ;;  %v1773_v9 = vpack.c.bf16 %v975_v7, %v970_v6  ;;  %v980_v13 = vld [vmem:[%s2775_s9 + $0xa0] sm:$0xff]  ;;  %v1015_v32 = vld [vmem:[%s2775_s9 + $0x1b8] sm:$0xff]  ;;  %v1021_v34 = vld [vmem:[%s2775_s9 + $0x1e8] sm:$0xff] }
  0x37   : > { %1710 = vmatprep.subr.bf16.mxu0 %v1964_v40  ;;  %v1000_v24 = vld [vmem:[%s2775_s9 + $0x140] sm:$0xff]  ;;  %v1026_v35 = vld [vmem:[%s2775_s9 + $0x210] sm:$0xff]  ;;  %v1025_v38 = vld [vmem:[%s2775_s9 + $0x208] sm:$0xff] }
  0x38   : > { %1724 = vmatpush3.bf16.msra.mxu1 %v1723_v60  ;;  %v966_v60 = vld [vmem:[%s2775_s9 + $0x30] sm:$0xff]  ;;  %v1791_v37 = vpack.c.bf16 %v1026_v35, %v1021_v34  ;;  %v967_v43 = vld [vmem:[%s2775_s9 + $0x38] sm:$0xff]  ;;  %v992_v1 = vld [vmem:[%s2775_s9 + $0x100] sm:$0xff] }
  0x39   : > { %1725 = vmatprep.subr.bf16.mxu1 %v1964_v40  ;;  %v1767_v62 = vpack.c.bf16 %v966_v60, %v961_v59  ;;  %v962_v42 = vld [vmem:[%s2775_s9 + $0x10] sm:$0xff]  ;;  %v987_v60 = vld [vmem:[%s2775_s9 + $0xd8] sm:$0xff]  ;;  %v1368_v34 = vld [vmem:[%s2774_s8] ss:$0 sm:$0xff] }
  0x3a   : > { %1712 = vmatpush3.bf16.msra.mxu0 %v1711_v49  ;;  %v982_v59 = vld [vmem:[%s2775_s9 + $0xb0] sm:$0xff]  ;;  %v964_v35 = vld [vmem:[%s2775_s9 + $0x20] sm:$0xff] }
  0x3b   : > { %1713 = vmatprep.subr.bf16.mxu0 %v1964_v40  ;;  %v1002_v7 = vld [vmem:[%s2775_s9 + $0x150] sm:$0xff] }
  0x3c   : > { %1727 = vmatpush3.bf16.msra.mxu1 %v1726_v63  ;;  %v965_v63 = vld [vmem:[%s2775_s9 + $0x28] sm:$0xff] }
  0x3d   : > { %1728 = vmatprep.subr.bf16.mxu1 %v1964_v40 }
  0x3e   : > { %1715 = vmatpush3.bf16.msra.mxu0 %v1714_v52  ;;  %v1759_v52 = vpack.c.bf16 %v874_v51, %v873_v50  ;;  %v1801_v50 = vpack.c.bf16 %v967_v43, %v962_v42  ;;  %v974_v43 = vld [vmem:[%s2775_s9 + $0x70] sm:$0xff] }
  0x3f   : > { %1716 = vmatprep.subr.bf16.mxu0 %v1964_v40 }
  0x40   : > { %1730 = vmatpush3.bf16.msra.mxu1 %v1729_v2  ;;  %v1769_v2 = vpack.c.bf16 %v965_v63, %v960_v61  ;;  %v993_v61 = vld [vmem:[%s2775_s9 + $0x108] sm:$0xff]  ;;  %v1809_v63 = vpack.c.bf16 %v987_v60, %v982_v59 }
  0x41   : > { %1731 = vmatprep.subr.bf16.mxu1 %v1964_v40  ;;  %v1029_v59 = vld [vmem:[%s2775_s9 + $0x228] sm:$0xff] }
  0x42   : > { %1718 = vmatpush3.bf16.msra.mxu0 %v1717_v55  ;;  %v1762_v55 = vpack.c.bf16 %v876_v54, %v875_v53  ;;  %v972_v53 = vld [vmem:[%s2775_s9 + $0x60] sm:$0xff]  ;;  %v977_v54 = vld [vmem:[%s2775_s9 + $0x88] sm:$0xff] }
  0x43   : > { %1527 = vmatprep.subr.mxu0 %v1966_v48 }
  0x44   : > { %1733 = vmatpush3.bf16.msra.mxu1 %v1732_v5  ;;  %v976_v5 = vld [vmem:[%s2775_s9 + $0x80] sm:$0xff] }
  0x45   : > { %1734 = vmatprep.subr.bf16.mxu1 %v1964_v40 }
  0x46   : > { %1528 = vmatpush3.msra.mxu0 %v464_v56  ;;  %v877_v56 = vld [vmem:[%s2773_s7 + $0x30] sm:$0xff] }
  0x47   : > { %1530 = vmatmul.mubr.msk.f32.vlgmr.msra.gmra.mrb[2].mxu0 %vm472_vm1, %v389_v57  ;;  %v878_v57 = vld [vmem:[%s2773_s7 + $0x38] sm:$0xff]  ;;  %1768 = vmatprep.subr.bf16.mxu0 %v1767_v62  ;;  %v998_v62 = vld [vmem:[%s2775_s9 + $0x130] sm:$0xff] }
  0x48   : > { %1131 = vmatprep.mubr.f32.mxu0 %v1966_v48  ;;  %1736 = vmatpush3.bf16.msra.mxu1 %v1735_v8  ;;  %v1765_v58 = vpack.c.bf16 %v878_v57, %v877_v56  ;;  %v1771_v8 = vpack.c.bf16 %v976_v5, %v971_v4  ;;  %v988_v56 = vld [vmem:[%s2775_s9 + $0xe0] sm:$0xff]  ;;  %v1805_v57 = vpack.c.bf16 %v977_v54, %v972_v53  ;;  %v1009_v53 = vld [vmem:[%s2775_s9 + $0x188] sm:$0xff] }
  0x49   : > { %1737 = vmatprep.subr.bf16.mxu1 %v1964_v40  ;;  %1770 = vmatpush1.bf16.msra.mxu0 %v1769_v2  ;;  %v1811_v0 = vpack.c.bf16 %v998_v62, %v993_v61  ;;  %v997_v2 = vld [vmem:[%s2775_s9 + $0x128] sm:$0xff]  ;;  %v1008_v4 = vld [vmem:[%s2775_s9 + $0x180] sm:$0xff]  ;;  %v1034_v61 = vld [vmem:[%s2775_s9 + $0x250] sm:$0xff] }
  0x4a   : > { %1772 = vmatprep.subr.bf16.mxu0 %v1771_v8  ;;  %v1813_v5 = vpack.c.bf16 %v997_v2, %v992_v1  ;;  %v1007_v8 = vld [vmem:[%s2775_s9 + $0x178] sm:$0xff] }
  0x4b   : > { %v1039_v62 = vld [vmem:[%s2775_s9 + $0x278] sm:$0xff] }
  0x4c   : > { %1739 = vmatpush3.bf16.msra.mxu1 %v1738_v11  ;;  %v986_v11 = vld [vmem:[%s2775_s9 + $0xd0] sm:$0xff] }
  0x4d   : > { %1740 = vmatprep.subr.bf16.mxu1 %v1964_v40  ;;  %v1775_v12 = vpack.c.bf16 %v986_v11, %v981_v10  ;;  %1774 = vmatpush1.bf16.msra.mxu0 %v1773_v9  ;;  %v1013_v9 = vld [vmem:[%s2775_s9 + $0x1a8] sm:$0xff]  ;;  %v1018_v10 = vld [vmem:[%s2775_s9 + $0x1d0] sm:$0xff]  ;;  %v1817_v11 = vpack.c.bf16 %v1007_v8, %v1002_v7 }
  0x4f   : > { %1776 = vmatprep.subr.bf16.mxu0 %v1775_v12  ;;  %v1819_v12 = vpack.c.bf16 %v1018_v10, %v1013_v9 }
  0x50   : > { %1742 = vmatpush3.bf16.msra.mxu1 %v1741_v14  ;;  %v985_v14 = vld [vmem:[%s2775_s9 + $0xc8] sm:$0xff] }
  0x51   : > { %1743 = vmatprep.subr.bf16.mxu1 %v1964_v40 }
 0x104   : > { %v1405_v15 = vpop.f32.mrb[0].mxu0 }
 0x105   : > { %v1406_v17 = vpop.f32.mrb[1].mxu0 }
 0x106   : > { %v1440_v18 = vpop.f32.mrb[0].mxu1  ;;  %v1407_v19 = vadd.f32 %v1406_v17, %v1405_v15  ;;  %v1777_v15 = vpack.c.bf16 %v985_v14, %v980_v13  ;;  %v996_v17 = vld [vmem:[%s2775_s9 + $0x120] sm:$0xff]  ;;  %v1017_v14 = vld [vmem:[%s2775_s9 + $0x1c8] sm:$0xff] }
 0x107   : > { %v1441_v20 = vpop.f32.mrb[1].mxu1  ;;  %v1012_v13 = vld [vmem:[%s2775_s9 + $0x1a0] sm:$0xff] }
 0x108   : > { %v1442_v21 = vadd.f32 %v1441_v20, %v1440_v18  ;;  %v543_v22 = vadd.f32 %v1407_v19, %v1363_v16  ;;  %v991_v16 = vld [vmem:[%s2775_s9 + $0xf8] sm:$0xff]  ;;  %v990_v18 = vld [vmem:[%s2775_s9 + $0xf0] sm:$0xff]  ;;  %1778 = vmatpush1.bf16.msra.mxu0 %v1777_v15 }
 0x109   : > { %v1779_v19 = vpack.c.bf16 %v996_v17, %v991_v16  ;;  %v995_v20 = vld [vmem:[%s2775_s9 + $0x118] sm:$0xff]  ;;  %v1028_v16 = vld [vmem:[%s2775_s9 + $0x220] sm:$0xff]  ;;  %v1821_v17 = vpack.c.bf16 %v1017_v14, %v1012_v13 }
 0x10a   : > { %v613_v23 = vadd.f32 %v1442_v21, %v543_v22  ;;  %v1781_v21 = vpack.c.bf16 %v995_v20, %v990_v18  ;;  %v1001_v22 = vld [vmem:[%s2775_s9 + $0x148] sm:$0xff]  ;;  %v1023_v15 = vld [vmem:[%s2775_s9 + $0x1f8] sm:$0xff] }
 0x10b   : > { %1780 = vmatprep.subr.bf16.mxu0 %v1779_v19  ;;  %v1823_v18 = vpack.c.bf16 %v1028_v16, %v1023_v15  ;;  %v1022_v19 = vld [vmem:[%s2775_s9 + $0x1f0] sm:$0xff]  ;;  %v1027_v20 = vld [vmem:[%s2775_s9 + $0x218] sm:$0xff] }
 0x10c   : > { %1782 = vmatpush1.bf16.msra.mxu0 %v1781_v21  ;;  %v1825_v21 = vpack.c.bf16 %v1027_v20, %v1022_v19 }
 0x11a   : > { %v682_v26 = vpop.f32.mrb[2].mxu0 }
 0x11b   : > { %v683_v27 = vadd.f32 %v682_v26, %v613_v23  ;;  %v1531_v28 = vpop.f32.mrb[3].mxu0  ;;  %v1006_v23 = vld [vmem:[%s2775_s9 + $0x170] sm:$0xff]  ;;  %v1005_v26 = vld [vmem:[%s2775_s9 + $0x168] sm:$0xff] }
 0x11c   : > { %v1783_v25 = vpack.c.bf16 %v1006_v23, %v1001_v22  ;;  %v1011_v28 = vld [vmem:[%s2775_s9 + $0x198] sm:$0xff]  ;;  %v1036_v23 = vld [vmem:[%s2775_s9 + $0x260] sm:$0xff] }
 0x11d   : > { %v686_v30 = vmax.f32 %v683_v27, 0.0  ;;  %v1785_v27 = vpack.c.bf16 %v1005_v26, %v1000_v24  ;;  %v1031_v22 = vld [vmem:[%s2775_s9 + $0x238] sm:$0xff] }
 0x11e   : > { %1784 = vmatprep.subr.bf16.mxu0 %v1783_v25  ;;  %v1795_v24 = vpack.c.bf16 %v1036_v23, %v1031_v22  ;;  %v1030_v25 = vld [vmem:[%s2775_s9 + $0x230] sm:$0xff]  ;;  %v1035_v26 = vld [vmem:[%s2775_s9 + $0x258] sm:$0xff] }
 0x11f   : > { %1565 = vmatmul.mubr.f32.vlgmr.msra.gmra.mrb[2].mxu1 %v686_v30  ;;  %v1010_v30 = vld [vmem:[%s2775_s9 + $0x190] sm:$0xff]  ;;  %1786 = vmatpush1.bf16.msra.mxu0 %v1785_v27  ;;  %v1033_v27 = vld [vmem:[%s2775_s9 + $0x248] sm:$0xff] }
 0x120   : > { %1745 = vmatpush3.bf16.msra.mxu1 %v1744_v29  ;;  %1583 = vmatprep.mubr.msk.f32.mxu1 %vm1965_vm0, %v1966_v48  ;;  %v1016_v29 = vld [vmem:[%s2775_s9 + $0x1c0] sm:$0xff] }
 0x121   : > { %1746 = vmatprep.subr.bf16.mxu1 %v1964_v40  ;;  %v1787_v31 = vpack.c.bf16 %v1016_v29, %v1011_v28  ;;  %v1797_v28 = vpack.c.bf16 %v1035_v26, %v1030_v25  ;;  %v1038_v29 = vld [vmem:[%s2775_s9 + $0x270] sm:$0xff] }
 0x123   : > { %1788 = vmatprep.subr.bf16.mxu0 %v1787_v31  ;;  %v1037_v31 = vld [vmem:[%s2775_s9 + $0x268] sm:$0xff] }
 0x124   : > { %1748 = vmatpush3.bf16.msra.mxu1 %v1747_v33  ;;  %v1789_v33 = vpack.c.bf16 %v1015_v32, %v1010_v30  ;;  %v1032_v30 = vld [vmem:[%s2775_s9 + $0x240] sm:$0xff]  ;;  %v1827_v32 = vpack.c.bf16 %v1038_v29, %v1033_v27 }
 0x125   : > { %1749 = vmatprep.subr.bf16.mxu1 %v1964_v40 }
 0x126   : > { %1790 = vmatpush1.bf16.msra.mxu0 %v1789_v33  ;;  %v1829_v33 = vpack.c.bf16 %v1037_v31, %v1032_v30 }
 0x127   : > { %1792 = vmatprep.subr.bf16.mxu0 %v1791_v37 }
 0x128   : > { %1751 = vmatpush3.bf16.msra.mxu1 %v1750_v36  ;;  %v1020_v36 = vld [vmem:[%s2775_s9 + $0x1e0] sm:$0xff] }
 0x129   : > { %1752 = vmatprep.subr.bf16.mxu1 %v1964_v40 }
 0x12c   : > { %1754 = vmatpush3.bf16.msra.mxu1 %v1753_v39  ;;  %v1793_v39 = vpack.c.bf16 %v1025_v38, %v1020_v36  ;;  %v969_v36 = vld [vmem:[%s2775_s9 + $0x48] sm:$0xff] }
 0x12d   : > { %1755 = vmatprep.subr.bf16.mxu1 %v1964_v40 }
 0x12e   : > { %1794 = vmatpush1.bf16.msra.mxu0 %v1793_v39 }
 0x12f   : > { %1796 = vmatprep.subr.bf16.mxu0 %v1795_v24 }
 0x132   : > { %1798 = vmatpush1.bf16.msra.mxu0 %v1797_v28 }
 0x133   : > { %1831 = vmatprep.subr.bf16.mxu0 %v1964_v40 }
 0x1f2   : > { %v776_v44 = vpop.f32.mrb[2].mxu1 }
 0x1f3   : > { %v777_v45 = vadd.f32 %v1365_v41, %v776_v44  ;;  %v1566_v46 = vpop.f32.mrb[3].mxu1  ;;  %v1366_v41 = vld [vmem:[%s2772_s6] ss:$0 sm:$0xff] }
 0x1f4   : > { %v978_v46 = vld [vmem:[%s2775_s9 + $0x90] sm:$0xff] }
 0x1f5   : > { %v780_v49 = vmax.f32 %v777_v45, 0.0  ;;  %v973_v45 = vld [vmem:[%s2775_s9 + $0x68] sm:$0xff] }
 0x1f7   : > { %1584 = vmatmul.mubr.msk.f32.vlgmr.msra.gmra.mrb[4].mxu1 %vm796_vm2, %v780_v49 }
 0x1f8   : > { %1757 = vmatpush3.bf16.msra.mxu1 %v1756_v47  ;;  %1602 = vmatprep.mubr.msk.f32.mxu1 %vm1965_vm0, %v1966_v48 }
 0x1f9   : > { %1758 = vmatprep.subr.bf16.mxu1 %v1964_v40 }
 0x1fc   : > { %1760 = vmatpush3.bf16.msra.mxu1 %v1759_v52  ;;  %v1803_v52 = vpack.c.bf16 %v978_v46, %v973_v45  ;;  %v984_v46 = vld [vmem:[%s2775_s9 + $0xc0] sm:$0xff] }
 0x1fd   : > { %1761 = vmatprep.subr.bf16.mxu1 %v1964_v40 }
 0x200   : > { %1763 = vmatpush3.bf16.msra.mxu1 %v1762_v55  ;;  %v983_v55 = vld [vmem:[%s2775_s9 + $0xb8] sm:$0xff] }
 0x201   : > { %1764 = vmatprep.subr.bf16.mxu1 %v1964_v40 }
 0x204   : > { %1766 = vmatpush3.bf16.msra.mxu1 %v1765_v58  ;;  %v1807_v58 = vpack.c.bf16 %v988_v56, %v983_v55  ;;  %v1014_v55 = vld [vmem:[%s2775_s9 + $0x1b0] sm:$0xff]  ;;  %v1019_v56 = vld [vmem:[%s2775_s9 + $0x1d8] sm:$0xff] }
 0x205   : > { %1800 = vmatprep.subr.bf16.mxu1 %v1799_v3  ;;  %v1003_v3 = vld [vmem:[%s2775_s9 + $0x158] sm:$0xff] }
 0x206   : > { %v1815_v6 = vpack.c.bf16 %v1008_v4, %v1003_v3  ;;  %v1040_v4 = vld [vmem:[%s2776_s10] sm:$0x1f] }
 0x2ca   : > { %v866_v44 = vpop.f32.mrb[4].mxu1 }
 0x2cb   : > { %v867_v47 = vadd.f32 %v1366_v41, %v866_v44  ;;  %v1585_v49 = vpop.f32.mrb[5].mxu1  ;;  %v1832_v41 = vpack.c.bf16 %v969_v36, %v964_v35  ;;  %v979_v44 = vld [vmem:[%s2775_s9 + $0x98] sm:$0xff] }
 0x2cc   : > { %v1835_v45 = vpack.c.bf16 %v979_v44, %v974_v43 }
 0x2cd   : > { %v870_v51 = vmax.f32 %v867_v47, 0.0  ;;  %v989_v47 = vld [vmem:[%s2775_s9 + $0xe8] sm:$0xff] }
 0x2ce   : > { %v1838_v49 = vpack.c.bf16 %v989_v47, %v984_v46 }
 0x2cf   : > { %1603 = vmatmul.mubr.msk.f32.vlgmr.msra.gmra.mrb[6].mxu1 %vm796_vm2, %v870_v51 }
 0x2d0   : > { %1802 = vmatpush1.bf16.msra.mxu1 %v1801_v50  ;;  %1202 = vmatprep.mubr.f32.mxu1 %v1966_v48  ;;  %v994_v50 = vld [vmem:[%s2775_s9 + $0x110] sm:$0xff] }
 0x2d1   : > { %1804 = vmatprep.subr.bf16.mxu1 %v1803_v52  ;;  %v1004_v52 = vld [vmem:[%s2775_s9 + $0x160] sm:$0xff] }
 0x2d2   : > { %v1844_v54 = vpack.c.bf16 %v1009_v53, %v1004_v52 }
 0x2d4   : > { %1806 = vmatpush1.bf16.msra.mxu1 %v1805_v57  ;;  %v1847_v57 = vpack.c.bf16 %v1019_v56, %v1014_v55 }
 0x2d5   : > { %1808 = vmatprep.subr.bf16.mxu1 %v1807_v58  ;;  %v1024_v58 = vld [vmem:[%s2775_s9 + $0x200] sm:$0xff] }
 0x2d6   : > { %v1850_v60 = vpack.c.bf16 %v1029_v59, %v1024_v58 }
 0x2d8   : > { %1810 = vmatpush1.bf16.msra.mxu1 %v1809_v63  ;;  %v1853_v63 = vpack.c.bf16 %v1039_v62, %v1034_v61 }
 0x2d9   : > { %1812 = vmatprep.subr.bf16.mxu1 %v1811_v0  ;;  %v1042_v0 = vlaneseq }
 0x2db   : > { %v1043_v1 = vshrl.u32 %v1042_v0, 7 }
 0x2dc   : > { %1814 = vmatpush1.bf16.msra.mxu1 %v1813_v5 }
 0x2dd   : > { %1816 = vmatprep.subr.bf16.mxu1 %v1815_v6  ;;  %v1044_v2 = vsub.s32 0, %v1043_v1  ;;  %v1052_v3 = vsub.s32 2, %v1043_v1  ;;  %v1048_v5 = vsub.s32 1, %v1043_v1  ;;  %v1056_v6 = vsub.s32 3, %v1043_v1 }
 0x2df   : > { %v1045_v7 = vrot.slane %v1040_v4, %v1044_v2  ;;  %v1053_v8 = vrot.slane %v1040_v4, %v1052_v3  ;;  %v1049_v9 = vrot.slane %v1040_v4, %v1048_v5  ;;  %v1057_v10 = vrot.slane %v1040_v4, %v1056_v6 }
 0x2e0   : > { %1818 = vmatpush1.bf16.msra.mxu1 %v1817_v11 }
 0x2e1   : > { %1820 = vmatprep.subr.bf16.mxu1 %v1819_v12 }
 0x2e4   : > { %1822 = vmatpush1.bf16.msra.mxu1 %v1821_v17 }
 0x2e5   : > { %1824 = vmatprep.subr.bf16.mxu1 %v1823_v18  ;;  %v1060_v18 = vsub.s32 4, %v1043_v1 }
 0x2e7   : > { %v1061_v19 = vrot.slane %v1040_v4, %v1060_v18 }
 0x2e8   : > { %1826 = vmatpush1.bf16.msra.mxu1 %v1825_v21 }
 0x2e9   : > { %1828 = vmatprep.subr.bf16.mxu1 %v1827_v32 }
 0x2ec   : > { %1830 = vmatpush1.bf16.msra.mxu1 %v1829_v33 }
 0x3a2   : > { %v955_v37 = vpop.f32.mrb[6].mxu1 }
 0x3a3   : > { %v956_v38 = vadd.f32 %v1368_v34, %v955_v37  ;;  %v1604_v39 = vpop.f32.mrb[7].mxu1 }
 0x3a5   : > { %v959_v42 = vmax.f32 %v956_v38, 0.0 }
 0x3a7   : > { %1132 = vmatmul.mubr.f32.vlgmr.msra.gmra.mrb[4].mxu0 %v959_v42  ;;  %1203 = vmatmul.mubr.f32.vlgmr.msra.gmra.mrb[8].mxu1 %v959_v42 }
 0x3a8   : > { %1833 = vmatpush3.bf16.msra.mxu0 %v1832_v41  ;;  %1637 = vmatprep.mubr.msk.f32.mxu0 %vm1965_vm0, %v1966_v48  ;;  %v999_v48 = vld [vmem:[%s2775_s9 + $0x138] sm:$0xff] }
 0x3a9   : > { %1834 = vmatprep.subr.bf16.mxu0 %v1964_v40  ;;  %v1841_v51 = vpack.c.bf16 %v999_v48, %v994_v50 }
 0x3ac   : > { %1836 = vmatpush3.bf16.msra.mxu0 %v1835_v45 }
 0x3ad   : > { %1837 = vmatprep.subr.bf16.mxu0 %v1964_v40 }
 0x3b0   : > { %1839 = vmatpush3.bf16.msra.mxu0 %v1838_v49 }
 0x3b1   : > { %1840 = vmatprep.subr.bf16.mxu0 %v1964_v40 }
 0x3b4   : > { %1842 = vmatpush3.bf16.msra.mxu0 %v1841_v51 }
 0x3b5   : > { %1843 = vmatprep.subr.bf16.mxu0 %v1964_v40 }
 0x3b8   : > { %1845 = vmatpush3.bf16.msra.mxu0 %v1844_v54 }
 0x3b9   : > { %1846 = vmatprep.subr.bf16.mxu0 %v1964_v40 }
 0x3bc   : > { %1848 = vmatpush3.bf16.msra.mxu0 %v1847_v57 }
 0x3bd   : > { %1849 = vmatprep.subr.bf16.mxu0 %v1964_v40 }
 0x3c0   : > { %1851 = vmatpush3.bf16.msra.mxu0 %v1850_v60 }
 0x3c1   : > { %1852 = vmatprep.subr.bf16.mxu0 %v1964_v40 }
 0x3c4   : > { %1854 = vmatpush3.bf16.msra.mxu0 %v1853_v63 }
 0x3c7   : > { %1638 = vmatmul.mubr.f32.vlgmr.msra.gmra.mrb[6].mxu0 %v959_v42 }
 0x47a   : > { %v1133_v40 = vpop.f32.mrb[4].mxu0  ;;  %v1204_v11 = vpop.f32.mrb[8].mxu1 }
 0x47b   : > { %v1134_v12 = vadd.f32 %v1133_v40, %v1045_v7  ;;  %v1205_v13 = vadd.f32 %v1204_v11, %v1053_v8  ;;  %v1135_v14 = vpop.f32.mrb[5].mxu0  ;;  %v1206_v15 = vpop.f32.mrb[9].mxu1 }
 0x47c   : > { %v1136_v16 = vadd.f32 %v1135_v14, %v1049_v9  ;;  %v1207_v17 = vadd.f32 %v1206_v15, %v1057_v10 }
 0x47d   : > { %1279 = vst [vmem:[%s379_s26] sm:$0xff] %v1134_v12  ;;  %1281 = vst [vmem:[%s379_s26 + $0x10] sm:$0xff] %v1205_v13 }
 0x47e   : > { %1280 = vst [vmem:[%s379_s26 + $0x8] sm:$0xff] %v1136_v16  ;;  %1282 = vst [vmem:[%s379_s26 + $0x18] sm:$0xff] %v1207_v17 }
 0x49a   : > { %v1275_v20 = vpop.f32.mrb[6].mxu0 }
 0x49b   : > { %v1276_v21 = vadd.f32 %v1275_v20, %v1061_v19  ;;  %v1639_v22 = vpop.f32.mrb[7].mxu0 }
 0x49d   : > { %1283 = vst.msk [vmem:[%s379_s26 + $0x20] sm:$0xff] %vm472_vm1, %v1276_v21 }
 0x49e   : > { %1913 = shalt.err (!%p1910_p3)
}
 0x49f   : > { %s1914_s16 = scalar_lea.hbm %s2721_s19, 640  ;;  %s1918_s29 = scalar_lea.hbm %s2777_s11, 1280 }
 0x4a0   : > { %p1915_p4 = scmp.ne.s32.totalorder %s2721_s19, %s1914_s16  ;;  %p1919_p9 = scmp.lt.u32.totalorder %s2721_s19, %s2777_s11 }
 0x4a1   : > { %p1920_p10 = scmp.lt.u32.totalorder %s1918_s29, %s1914_s16  ;;  %p1922_p12 = scmp.lt.u32.totalorder %s1914_s16, %s2721_s19 }
 0x4a2   : > { %p1916_p7 = pnand %p1915_p4, %p2066_p5 }
 0x4a3   : > { %p1921_p11 = por %p1920_p10, %p1919_p9 }
 0x4a4   : > { %p1917_p8 = pneg %p1916_p7 }
 0x4a5   : > { %p1923_p13 = por %p1922_p12, %p1921_p11 }
 0x4a7   : > { %p1924_p0 = pnand %p1923_p13, %p1917_p8 }
 0x4a9   : > { %1927 = shalt.err (!%p1924_p0)
}
 0x4aa   : > { %1858 = dma.vmem_to_hbm [thread:$0]  (%p2066_p5), %s2723_s25, 640, %s2721_s19, %s1285_s12  }
 0x4ab PF: > { %p1864_p1 = scmp.ge.s32.totalorder %s1962_s20, 2  ;;  %s1311_s14 = sand.u32 1, %s1950_s17  }
 0x4ac   : > { %s1312_s21 = scalar_lea.sflag [#allocation3], %s1311_s14 }
 0x4ad   : > { %p1861_p2 = pnand %p1864_p1, %p2070_p6 }
 0x4af   : > { %1945 = dma.done.wait (!%p1861_p2), %s1312_s21, 640  }
 0x4b0   : > { %1947 = vsyncadd (!%p1861_p2), %s1312_s21, 4294966656  ;;  %s2783_s22 = sld [smem:[#allocation5_spill]]  ;;  %s2784_s19 = sld [smem:[#allocation6_spill]] }
 0x4b1   : > { %p21_p3 = scmp.ge.s32.totalorder %s2053_s23, 4   ;;  %s2785_s17 = smov %s1954_s18 }
 0x4b2   : > { %s2787_s20 = smov %s2053_s23 }
 0x4b3   :  { %23 = sbr.rel (!%p21_p3) target bundleno = 3 (0x3), region = 99 }
 0x4b6   : > { %s2786_s18 = smov %s2783_s22 }
 0x4ba   :  { %1317 = vsyncpa [#allocation3], 1 }
 0x4bb   :  { %1319 = vsyncpa [#allocation3 + $0x1], 1 }

</bundles_post_ra>
